<compile_context>
chip_gen: v5e
topology: v5e:2x2
jax: 0.10.0
libtpu: 0.0.40
codegen_flags: <defaults>
</compile_context>

<pallas_src>
import functools

import jax
import jax.numpy as jnp
from jax.experimental import pallas as pl
from jax.experimental.pallas import tpu as pltpu


def _round_up(a, b):
    return pl.cdiv(a, b) * b


# ----------------------------------------------------------------------------
# Kernel bodies
# ----------------------------------------------------------------------------
def _conv_tanh_kernel_single_k(x_ref, w_ref, b_ref, o_ref):
    """Whole reduction axis in one tile (default 1x1-conv path).

    x_ref : (nb, K, tp)      f32  patches slice (P on lanes)
    w_ref : (C_out, K)       f32
    b_ref : (C_out, 1)       f32
    o_ref : (nb, C_out, tp)  out  lane-dense output block
    No scratch, no pl.when.
    """
    w = w_ref[...]
    b = b_ref[...]
    nb = x_ref.shape[0]
    for n in range(nb):                           # static unroll over batch tile
        acc = jnp.dot(w, x_ref[n], preferred_element_type=jnp.float32)
        o_ref[n] = jnp.tanh(acc + b).astype(o_ref.dtype)


def _conv_tanh_kernel_multi_k(x_ref, w_ref, b_ref, o_ref):
    """K tiled along the trailing 'arbitrary' grid axis.

    The output BlockSpec index is k-invariant, so the f32 output block stays
    resident in VMEM across k: accumulate straight into o_ref (no scratch).
    """
    k = pl.program_id(2)
    w = w_ref[...]
    nb = x_ref.shape[0]

    @pl.when(k == 0)
    def _init():
        for n in range(nb):
            o_ref[n] = jnp.dot(w, x_ref[n], preferred_element_type=jnp.float32)

    @pl.when(k != 0)
    def _accum():
        for n in range(nb):
            o_ref[n] += jnp.dot(w, x_ref[n], preferred_element_type=jnp.float32)

    @pl.when(k == pl.num_programs(2) - 1)
    def _finalize():
        b = b_ref[...]
        for n in range(nb):
            o_ref[n] = jnp.tanh(o_ref[n] + b)


# ----------------------------------------------------------------------------
# Tile selection
# ----------------------------------------------------------------------------
def _choose_tiles(N, K, P, C_out, *, target_bytes=1 << 20, tp_cap=4096,
                  tk_max=512):
    """Pick (nb, tk, tp) so the per-step (input + output) block is ~1 MiB:
    big enough to amortize the ~0.35 us/step overhead, small enough that
    double-buffering fits comfortably in VMEM on every generation (v7x has
    only 64 MiB physical VMEM)."""
    elem_bytes = 4                                        # f32 operands

    # Reduction tiling: single step unless K is genuinely large.
    tk = K if K <= tk_max else tk_max

    # Lane (P) tile: multiple of 128 (or the whole dim when P < 128).
    if P <= 128:
        tp = P
    else:
        tp_floor = (P // 128) * 128                       # largest mult-of-128 <= P
        tp_by_bytes = max(
            128, ((target_bytes // ((tk + C_out) * elem_bytes)) // 128) * 128)
        tp = int(min(tp_floor, tp_cap, tp_by_bytes))

    # Batch tile: grow (divisors of N only, so the batch axis never goes
    # ragged) while the per-step block is still below the target.
    nb = 1
    while (N % (nb * 2) == 0 and
           (nb * 2) * (tk + C_out) * tp * elem_bytes <= target_bytes):
        nb *= 2

    # v7x megacore: keep >= 2 iterations on the parallel (n, p) axes when the
    # problem allows it, so both TensorCores get work.
    if pl.cdiv(N, nb) * pl.cdiv(P, tp) < 2:
        if nb > 1:
            nb //= 2
        elif P > 128 and tp > 128:
            tp = max(128, ((tp // 2) // 128) * 128)
    return nb, tk, tp


# ----------------------------------------------------------------------------
# Fused  tanh(W @ patches + b)  over (N, K, P) -> (N, C_out, P)
# ----------------------------------------------------------------------------
def _matmul_bias_tanh(patches, w_mat, b_col, *, out_dtype):
    N, K, P = patches.shape
    C_out = w_mat.shape[0]

    patches = patches.astype(jnp.float32)       # no-op for f32 inputs
    w_mat = w_mat.astype(jnp.float32)
    b_col = b_col.astype(jnp.float32)

    nb, tk, tp = _choose_tiles(N, K, P, C_out)

    # K is padded only when it is large (real big convs); the default 1x1
    # path takes the single-K branch with no padding and no output slice.
    if K > tk:
        K_pad = _round_up(K, tk)
        if K_pad != K:
            patches = jnp.pad(patches, ((0, 0), (0, K_pad - K), (0, 0)))
            w_mat = jnp.pad(w_mat, ((0, 0), (0, K_pad - K)))
    else:
        K_pad = K

    n_steps = pl.cdiv(N, nb)
    p_steps = pl.cdiv(P, tp)

    flops = 2 * N * C_out * P * K + N * C_out * P
    bytes_accessed = (N * K * P * 4 + C_out * K * 4 + C_out * 4
                      + N * C_out * P * 4)
    cost = pl.CostEstimate(flops=flops, transcendentals=N * C_out * P,
                           bytes_accessed=bytes_accessed)

    # 32 MiB scoped VMEM is safe on every generation (incl. v7x, 64 MiB
    # physical); per-step blocks are ~1 MiB so double buffering has headroom.
    # NOTE: if an xprof trace ever shows exposed DMA on v5e/v6e, the patches
    # spec can take pipeline_mode=pl.Buffered(3) (kept at default depth 2
    # here so the same config also fits v7x).
    vmem_limit = 32 * 1024 * 1024

    if K_pad == tk:
        # ---- single reduction step: no scratch, no pl.when ---------------
        return pl.pallas_call(
            _conv_tanh_kernel_single_k,
            out_shape=jax.ShapeDtypeStruct((N, C_out, P), out_dtype),
            grid=(n_steps, p_steps),
            in_specs=[
                pl.BlockSpec((nb, tk, tp), lambda n, p: (n, 0, p)),   # patches
                pl.BlockSpec((C_out, tk), lambda n, p: (0, 0)),       # weight
                pl.BlockSpec((C_out, 1), lambda n, p: (0, 0)),        # bias
            ],
            out_specs=pl.BlockSpec((nb, C_out, tp), lambda n, p: (n, 0, p)),
            compiler_params=pltpu.CompilerParams(
                dimension_semantics=("parallel", "parallel"),
                vmem_limit_bytes=vmem_limit),
            cost_estimate=cost,
        )(patches, w_mat, b_col)

    # ---- K tiled: accumulate into the f32 output block (no scratch) ------
    out = pl.pallas_call(
        _conv_tanh_kernel_multi_k,
        out_shape=jax.ShapeDtypeStruct((N, C_out, P), jnp.float32),
        grid=(n_steps, p_steps, K_pad // tk),
        in_specs=[
            pl.BlockSpec((nb, tk, tp), lambda n, p, k: (n, k, p)),
            pl.BlockSpec((C_out, tk), lambda n, p, k: (0, k)),
            pl.BlockSpec((C_out, 1), lambda n, p, k: (0, 0)),
        ],
        out_specs=pl.BlockSpec((nb, C_out, tp), lambda n, p, k: (n, 0, p)),
        compiler_params=pltpu.CompilerParams(
            dimension_semantics=("parallel", "parallel", "arbitrary"),
            vmem_limit_bytes=vmem_limit),
        cost_estimate=cost,
    )(patches, w_mat, b_col)
    return out.astype(out_dtype)


# ----------------------------------------------------------------------------
# Patch extraction in (N, K, P) layout, K order = (C_in, kh, kw) matching
# PyTorch's weight.reshape(C_out, -1).  For the default 1x1 conv this is a
# pure reshape of the NCHW input (no data movement).
# ----------------------------------------------------------------------------
def _extract_patches_nkp(x, kernel_size, stride, padding):
    n, c, h, w = x.shape
    kh = kw = kernel_size
    if padding > 0:
        x = jnp.pad(x, ((0, 0), (0, 0), (padding, padding), (padding, padding)))
    hp, wp = h + 2 * padding, w + 2 * padding
    h_out = (hp - kh) // stride + 1
    w_out = (wp - kw) // stride + 1
    p_out = h_out * w_out

    if kh == 1 and kw == 1 and stride == 1:
        patches = x.reshape(n, c, p_out)             # zero-copy path (default config)
    else:
        # TODO(synk): for kh*kw > 1 fold the filter taps into the kernel's
        # K/'arbitrary' accumulation axis via shifted windows (pl.Element
        # offsets or manual make_async_copy) instead of materializing a
        # kh*kw-expanded im2col array in HBM.
        cols = []
        for i in range(kh):
            for j in range(kw):
                sl = x[:, :, i:i + stride * h_out:stride, j:j + stride * w_out:stride]
                cols.append(sl.reshape(n, c, 1, p_out))
        patches = jnp.concatenate(cols, axis=2)      # (N, C, kh*kw, P)
        patches = patches.reshape(n, c * kh * kw, p_out)
    return patches, (h_out, w_out)


# ----------------------------------------------------------------------------
# ConvTanh forward (NCHW in / NCHW out, matching the PyTorch module)
# ----------------------------------------------------------------------------
@functools.partial(jax.jit, static_argnames=("kernel_size", "stride", "padding"))
def conv_tanh(x, weight, bias, *, kernel_size=1, stride=1, padding=0):
    """
    x      : (N, C_in, H, W)          float32, NCHW
    weight : (C_out, C_in, kh, kw)    float32 (PyTorch layout)
    bias   : (C_out,)                 float32
    returns: (N, C_out, H_out, W_out) float32
    """
    n = x.shape[0]
    c_out = weight.shape[0]

    patches, (h_out, w_out) = _extract_patches_nkp(x, kernel_size, stride, padding)
    w_mat = weight.reshape(c_out, -1)                # (C_out, C_in*kh*kw)
    b_col = bias.reshape(c_out, 1)

    out = _matmul_bias_tanh(patches, w_mat, b_col, out_dtype=x.dtype)
    return out.reshape(n, c_out, h_out, w_out)       # already NCHW, no transpose


# ----------------------------------------------------------------------------
# Demo / self-test
# ----------------------------------------------------------------------------
if __name__ == "__main__":
    # Module config (ConvTanh defaults): kernel_size=1, stride=1, padding=0
    in_channels, out_channels = 4, 4
    kernel_size, stride, padding = 1, 1, 0
    batch, spatial = 2, 16

    key = jax.random.PRNGKey(0)
    kx, kw_, kb = jax.random.split(key, 3)

    x = jax.random.normal(kx, (batch, in_channels, spatial, spatial), jnp.float32)

    # Deterministic init mimicking nn.Conv2d default: U(-1/sqrt(fan_in), ...)
    fan_in = in_channels * kernel_size * kernel_size
    bound = 1.0 / (fan_in ** 0.5)
    weight = jax.random.uniform(
        kw_, (out_channels, in_channels, kernel_size, kernel_size),
        jnp.float32, -bound, bound)
    bias = jax.random.uniform(kb, (out_channels,), jnp.float32, -bound, bound)

    y = conv_tanh(x, weight, bias,
                  kernel_size=kernel_size, stride=stride, padding=padding)
    y = jax.block_until_ready(y)

    # Plain-JAX reference (full f32 precision) to sanity-check the kernel.
    y_ref = jax.lax.conv_general_dilated(
        x, weight, window_strides=(stride, stride),
        padding=[(padding, padding), (padding, padding)],
        dimension_numbers=("NCHW", "OIHW", "NCHW"),
        precision=jax.lax.Precision.HIGHEST)
    y_ref = jnp.tanh(y_ref + bias.reshape(1, -1, 1, 1))

    assert y.shape == (batch, out_channels, spatial, spatial), y.shape
    max_err = float(jnp.max(jnp.abs(y - y_ref)))
    # f32 operands end-to-end; tolerance covers any MXU multi-pass rounding.
    assert max_err < 2e-2, max_err

    print("KERNEL_OK")
</pallas_src>

<mosaic_0001>
module attributes {stable_mosaic.version = 11 : i64} {
  func.func @_conv_tanh_kernel_single_k(%arg0: i32, %arg1: i32, %arg2: memref<1x4x256xf32, #tpu.memory_space<vmem>>, %arg3: memref<4x4xf32, #tpu.memory_space<vmem>>, %arg4: memref<4x1xf32, #tpu.memory_space<vmem>>, %arg5: memref<1x4x256xf32, #tpu.memory_space<vmem>>) attributes {dimension_semantics = [#tpu.dimension_semantics<parallel>, #tpu.dimension_semantics<parallel>], iteration_bounds = array<i64: 2, 1>, scalar_prefetch = 0 : i64, scratch_operands = 0 : i64, tpu.core_type = #tpu.core_type<tc>, window_params = [{transform_indices = @transform_0, window_bounds = array<i64: 1, 4, 256>}, {pipeline_mode = #tpu.pipeline_mode<synchronous>, transform_indices = @transform_1, window_bounds = array<i64: 4, 4>}, {pipeline_mode = #tpu.pipeline_mode<synchronous>, transform_indices = @transform_2, window_bounds = array<i64: 4, 1>}, {transform_indices = @transform_3, window_bounds = array<i64: 1, 4, 256>}]} {
    %c0 = arith.constant 0 : index
    %c0_0 = arith.constant 0 : index
    %0 = vector.load %arg3[%c0, %c0_0] : memref<4x4xf32, #tpu.memory_space<vmem>>, vector<4x4xf32>
    %c0_1 = arith.constant 0 : index
    %c0_2 = arith.constant 0 : index
    %1 = vector.load %arg4[%c0_1, %c0_2] : memref<4x1xf32, #tpu.memory_space<vmem>>, vector<4x1xf32>
    %c0_3 = arith.constant 0 : index
    %c0_4 = arith.constant 0 : index
    %c0_5 = arith.constant 0 : index
    %2 = vector.load %arg2[%c0_3, %c0_4, %c0_5] : memref<1x4x256xf32, #tpu.memory_space<vmem>>, vector<1x4x256xf32>
    %3 = vector.shape_cast %2 : vector<1x4x256xf32> to vector<4x256xf32>
    %cst = arith.constant dense<0.000000e+00> : vector<4x256xf32>
    %4 = tpu.matmul %0, %3, %cst {dimension_numbers = #tpu.dot_dimension_numbers<[1], [0], [0], [1], [0, 0, 1, 1], [], []>} : vector<4x4xf32>, vector<4x256xf32>, vector<4x256xf32> -> vector<4x256xf32>
    %5 = vector.broadcast %1 : vector<4x1xf32> to vector<4x256xf32>
    %6 = arith.addf %4, %5 : vector<4x256xf32>
    %7 = math.tanh %6 : vector<4x256xf32>
    %c0_6 = arith.constant 0 : index
    %c0_7 = arith.constant 0 : index
    %c0_8 = arith.constant 0 : index
    %8 = vector.load %arg5[%c0_6, %c0_7, %c0_8] : memref<1x4x256xf32, #tpu.memory_space<vmem>>, vector<1x4x256xf32>
    %9 = vector.shape_cast %8 : vector<1x4x256xf32> to vector<4x256xf32>
    %10 = vector.shape_cast %7 : vector<4x256xf32> to vector<1x4x256xf32>
    tpu.vector_store %arg5[%c0_6, %c0_7, %c0_8], %10 {strides = array<i32>} : memref<1x4x256xf32, #tpu.memory_space<vmem>>, vector<1x4x256xf32>,
    return
  }
  func.func @transform_0(%arg0: i32, %arg1: i32) -> (i32, i32, i32) {
    %c0_i32 = arith.constant 0 : i32
    %c0_i32_0 = arith.constant 0 : i32
    return %arg0, %c0_i32, %arg1 : i32, i32, i32
  }
  func.func @transform_1(%arg0: i32, %arg1: i32) -> (i32, i32) {
    %c0_i32 = arith.constant 0 : i32
    %c0_i32_0 = arith.constant 0 : i32
    %c0_i32_1 = arith.constant 0 : i32
    return %c0_i32, %c0_i32_0 : i32, i32
  }
  func.func @transform_2(%arg0: i32, %arg1: i32) -> (i32, i32) {
    %c0_i32 = arith.constant 0 : i32
    %c0_i32_0 = arith.constant 0 : i32
    %c0_i32_1 = arith.constant 0 : i32
    return %c0_i32, %c0_i32_0 : i32, i32
  }
  func.func @transform_3(%arg0: i32, %arg1: i32) -> (i32, i32, i32) {
    %c0_i32 = arith.constant 0 : i32
    %c0_i32_0 = arith.constant 0 : i32
    return %arg0, %c0_i32, %arg1 : i32, i32, i32
  }
}

</mosaic_0001>

<bundles_post_ra>
// kernel: conv_tanh.1
= control target key start
LH: loop header
LB: loop body
LE: loop exit
PB: predicated region body
PF: predicated region fallthrough
CT: control target
= control target key end

     0   :  { %s458_s12 = smov 0   ;;  %s460_s13 = smov 0   ;;  %s500_s0 = inlined_call_operand.vmem [shape: f32[2,4,256], index: 0, kind: input, shape index: {}]   ;;  %s501_s1 = inlined_call_operand.vmem [shape: f32[4,4], index: 1, kind: input, shape index: {}]   ;;  %s502_s2 = inlined_call_operand.vmem [shape: f32[4,1], index: 2, kind: input, shape index: {}]   ;;  %s503_s3 = inlined_call_operand.vmem [shape: f32[2,4,256], index: 3, kind: output, shape index: {}]  }
   0x1   :  { %s462_s14 = smov 0  }
   0x2 LB: > { %s25_s15 = sadd.s32 1, %s431_s13  ;;  %p370_p0 = scmp.ge.s32.totalorder %s435_s14, 1  ;;  %s435_s14 = sphi %s462_s14, %s13_s14   ;;  %s431_s13 = sphi %s460_s13, %s505_s13   ;;  %s427_s12 = sphi %s458_s12, %s504_s12  }
   0x3   : > { %p27_p1 = scmp.ge.s32.totalorder %s25_s15, 2  ;;  %p158_p2 = scmp.lt.s32.totalorder %s435_s14, 3 }
   0x5   : > { %s507_s15 = smov (%p27_p1, %s25_s15), 0  ;;  %p159_p3 = pnand %p370_p0, %p158_p2 }
   0x6   : > { %p191_p4 = scmp.lt.s32.totalorder (!%p159_p3), %s427_s12, 1 }
   0x7   : > { %162 = sbr.rel (%p159_p3) target bundleno = 164 (0xa4), region = 32 }
   0xc   : > { %v437_v0 = vmov 0   ;;  %v211_v1 = vld [vmem:[%s502_s2] sm:$0xf]  ;;  %s509_s12 = smov (!%p191_p4, %s427_s12), 1  ;;  %vm226_vm0 = vcmask 1043456   ;;  %vm222_vm1 = vcmask 31744  }
   0xd   : > { %408 = vset.pattern.permute.xlu0 %v437_v0  ;;  %s381_s18 = sshll.u32 %s509_s12, 3  ;;  %v210_v3 = vld [vmem:[%s501_s1] sm:$0xf] }
   0xe   : > { %215 = vperm.xlu0 %408, %v211_v1   ;;  %s198_s21 = scalar_lea.vmem %s500_s0, %s381_s18  ;;  %s208_s26 = scalar_lea.vmem %s503_s3, %s381_s18 }
   0xf   : > { %v212_v2 = vld [vmem:[%s198_s21] sm:$0xff] }
  0x10   : > { %219 = vst [vmem:[#allocation1] ss:$2 sm:$0xff] %v212_v2 }
  0x17   : > { %v220_v4 = vld.sshfl [vmem:[#allocation1] sm:$0xff pattern:$0x75316420]  ;;  %v221_v5 = vld.sshfl [vmem:[#allocation1 + $0x8] sm:$0xff pattern:$0x75316420] }
  0x18   : > { %375 = vmatpush.msk.msra.mxu0 %vm226_vm0, %v220_v4  ;;  %377 = vmatpush.msk.msra.mxu1 %vm226_vm0, %v221_v5 }
  0x19   : > { %376 = vmatmul.msk.f32.vlgmr.msra.gmra.mxu0 %vm222_vm1, %v210_v3  ;;  %378 = vmatmul.msk.f32.vlgmr.msra.gmra.mxu1 %vm222_vm1, %v210_v3 }
  0x80   : > { %v216_v6 = vpop.permute.xlu0 %215 }
  0x96   : > { %v248_v7 = vpop.f32.mrf.mxu0  ;;  %v268_v8 = vpop.f32.mrf.mxu1 }
  0x97   : > { %v269_v9 = vadd.f32 %v268_v8, %v216_v6  ;;  %v249_v10 = vadd.f32 %v248_v7, %v216_v6 }
  0x99   : > { %409 = vtanh.f32 %v269_v9 }
  0x9a   : > { %411 = vtanh.f32 %v249_v10 }
  0x9f   : > { %v410_v11 = vpop.eup %409 }
  0xa0   : > { %v275_v12 = vrot.slane %v410_v11, 4  ;;  %v412_v13 = vpop.eup %411 }
  0xa2   : > { %v276_v14 = vsel %vm226_vm0, %v412_v13, %v275_v12 }
  0xa3   : > { %278 = vst [vmem:[%s208_s26] sm:$0xff] %v276_v14 }
  0xa4 PF: > { %s13_s14 = sadd.s32 1, %s435_s14   ;;  %s504_s12 = smov %s431_s13 }
  0xa5   : > { %p10_p5 = scmp.ge.s32.totalorder %s13_s14, 4   ;;  %s505_s13 = smov %s507_s15 }
  0xa7   :  { %12 = sbr.rel (!%p10_p5) target bundleno = 2 (0x2), region = 62 }

</bundles_post_ra>
